<compile_context>
chip_gen: v6e
topology: v6e:2x2x1
jax: 0.10.0
libtpu: 0.0.40
codegen_flags: <defaults>
</compile_context>

<pallas_src>
from typing import NamedTuple

import jax
import jax.numpy as jnp
from jax.experimental import pallas as pl
from jax.experimental.pallas import tpu as pltpu

LANE = 128
_SUBLANE = 8


def _round_up(x, m):
    return (x + m - 1) // m * m


def _vmem_cap_bytes():
    # Physical per-core VMEM (v5e/v6e: 128 MiB, v7x: 64 MiB). Conservative
    # fallback if the query is unavailable.
    try:
        return int(pltpu.get_tpu_info().vmem_capacity_bytes)
    except Exception:
        return 64 << 20


class ResLinearParams(NamedTuple):
    """Pre-padded, pre-cast Res_Linear weights — build once, reuse per call."""
    w1: jax.Array   # (d_pad, d_pad) compute_dtype, (in, out) layout
    b1: jax.Array   # (1, d_pad) f32
    w2: jax.Array   # (d_pad, d_pad) compute_dtype
    b2: jax.Array   # (1, d_pad) f32
    ngh: int        # unpadded feature size


def prepare_params(params, compute_dtype=jnp.bfloat16):
    """Pad feature dim to a multiple of 128 and cast weights to compute_dtype.

    Hoisted out of the per-forward path so the D^2 pad/cast HBM traffic is
    paid once instead of every call.
    """
    w1, b1, w2, b2 = params
    D = w1.shape[0]
    assert w1.shape == (D, D) and w2.shape == (D, D)
    d_pad = _round_up(D, LANE)

    def pad_w(w):
        w = w.astype(compute_dtype)
        if d_pad != D:
            w = jnp.zeros((d_pad, d_pad), compute_dtype).at[:D, :D].set(w)
        return w

    def pad_b(b):
        b = jnp.asarray(b).reshape(1, D).astype(jnp.float32)
        if d_pad != D:
            b = jnp.zeros((1, d_pad), jnp.float32).at[:, :D].set(b)
        return b

    return ResLinearParams(pad_w(w1), pad_b(b1), pad_w(w2), pad_b(b2), D)


def _res_linear_kernel(x_ref, w1_ref, b1_ref, w2_ref, b2_ref, o_ref, h_ref):
    x = x_ref[...]                                   # (TB, D) f32 activation tile
    xb = x.astype(w1_ref.dtype)                      # bf16 operand for the MXU

    # fc1 + ReLU  (bf16 x bf16 -> f32 accumulation); park intermediate in bf16
    # scratch: no f32 round-trip, half the intermediate VMEM / store traffic.
    h = jnp.dot(xb, w1_ref[...], preferred_element_type=jnp.float32) + b1_ref[...]
    h_ref[...] = jnp.maximum(h, 0.0).astype(h_ref.dtype)

    # fc2 + ReLU (bf16 scratch feeds the MXU directly).
    h2 = jnp.dot(h_ref[...], w2_ref[...],
                 preferred_element_type=jnp.float32) + b2_ref[...]

    # Residual add in f32 (x tile already resident in VMEM).
    o_ref[...] = (jnp.maximum(h2, 0.0) + x).astype(o_ref.dtype)


def res_linear(x, params, *, tb=256):
    """Forward of Res_Linear: relu(fc2(relu(fc1(x)))) + x.   x: (B, ngh)."""
    if not isinstance(params, ResLinearParams):
        params = prepare_params(params)
    w1_p, b1_p, w2_p, b2_p, D = params
    d_pad = w1_p.shape[0]
    compute_dtype = w1_p.dtype
    w_item = jnp.dtype(compute_dtype).itemsize

    B = x.shape[0]
    assert x.shape == (B, D)

    # Batch tiling: tile is a multiple of 8 sublanes; aim for >=4 grid steps so
    # v7x's two TensorCores both get work (dimension_semantics 'parallel') and
    # each still has tiles to software-pipeline. Larger default tb (256)
    # amortizes the ~0.35 us/step overhead on v6e's roomy VMEM.
    b8 = _round_up(B, _SUBLANE)
    tb = max(_SUBLANE, min(tb, b8))
    if -(-b8 // tb) < 4:
        tb = max(_SUBLANE, _round_up(-(-b8 // 4), _SUBLANE))
    b_pad = _round_up(B, tb)

    # Only materialize padded activations when padding is actually needed
    # (pad/slice is a full extra HBM read+write of the activations/outputs).
    x_f32 = x.astype(jnp.float32)
    padded = (b_pad != B) or (d_pad != D)
    x_p = (jnp.zeros((b_pad, d_pad), jnp.float32).at[:B, :D].set(x_f32)
           if padded else x_f32)

    grid = (b_pad // tb,)
    vmem_cap = _vmem_cap_bytes()
    resident = lambda i: (0, 0)                      # fetch once, reuse every tile

    def build(resident_bufs):
        kw = {"pipeline_mode": pl.Buffered(1)} if resident_bufs == 1 else {}
        # VMEM budget with the *actual* buffer counts.
        vmem_need = (resident_bufs * 2 * d_pad * d_pad * w_item   # w1, w2
                     + resident_bufs * 2 * _SUBLANE * d_pad * 4   # b1, b2 (sublane-padded)
                     + 2 * 2 * tb * d_pad * 4                     # x, out (double-buffered f32)
                     + tb * d_pad * w_item                        # bf16 h scratch
                     + (2 << 20))                                 # headroom
        # TODO(synk): if vmem_need exceeds the per-core cap (v7x: 64 MiB, i.e.
        # d_pad >~ 3072 with bf16 weights), stream K-panels of w1/w2 over an
        # extra 'arbitrary' grid axis (or pltpu.emit_pipeline) with an f32
        # accumulator instead of keeping both full weights resident.
        vmem_limit = int(min(max(vmem_need, 16 << 20),
                             max(vmem_cap - (2 << 20), 16 << 20)))
        return pl.pallas_call(
            _res_linear_kernel,
            out_shape=jax.ShapeDtypeStruct((b_pad, d_pad), jnp.float32),
            grid_spec=pltpu.PrefetchScalarGridSpec(
                num_scalar_prefetch=0,
                grid=grid,
                in_specs=[
                    pl.BlockSpec((tb, d_pad), lambda i: (i, 0)),      # x tile (pipelined)
                    pl.BlockSpec((d_pad, d_pad), resident, **kw),     # w1 (resident)
                    pl.BlockSpec((1, d_pad), resident, **kw),         # b1
                    pl.BlockSpec((d_pad, d_pad), resident, **kw),     # w2
                    pl.BlockSpec((1, d_pad), resident, **kw),         # b2
                ],
                out_specs=pl.BlockSpec((tb, d_pad), lambda i: (i, 0)),
                scratch_shapes=[pltpu.VMEM((tb, d_pad), compute_dtype)],
            ),
            compiler_params=pltpu.CompilerParams(
                dimension_semantics=("parallel",),   # batch tiles shard across TCs
                vmem_limit_bytes=vmem_limit,
            ),
        )

    out = None
    if hasattr(pl, "Buffered"):
        # Prefer single-buffered resident weights (halves the dominant VMEM
        # consumer); fall back to default double-buffering if the installed
        # Pallas doesn't support pipeline_mode=Buffered(1).
        try:
            out = build(1)(x_p, w1_p, b1_p, w2_p, b2_p)
        except Exception:
            out = None
    if out is None:
        out = build(2)(x_p, w1_p, b1_p, w2_p, b2_p)

    return out[:B, :D] if padded else out


def init_params(key, ngh):
    """Matches weights_init: Linear weight ~ N(0, 0.02), bias = 0.

    Weights stored as (in, out) = transpose of PyTorch nn.Linear's (out, in).
    """
    k1, k2 = jax.random.split(key)
    w1 = 0.02 * jax.random.normal(k1, (ngh, ngh), dtype=jnp.float32)
    b1 = jnp.zeros((ngh,), dtype=jnp.float32)
    w2 = 0.02 * jax.random.normal(k2, (ngh, ngh), dtype=jnp.float32)
    b2 = jnp.zeros((ngh,), dtype=jnp.float32)
    return (w1, b1, w2, b2)


def _ref(x, raw_params):
    w1, b1, w2, b2 = raw_params
    h = jnp.maximum(x @ w1 + b1, 0.0)
    h = jnp.maximum(h @ w2 + b2, 0.0)
    return h + x


if __name__ == "__main__":
    key = jax.random.PRNGKey(0)
    kx1, kp1, kx2, kp2 = jax.random.split(key, 4)

    # Case 1: small, lane-unaligned (exercises the padding path). x: (2, 32).
    B, ngh = 2, 32
    x = jax.random.normal(kx1, (B, ngh), dtype=jnp.float32)
    raw = init_params(kp1, ngh)
    params = prepare_params(raw)            # pad + bf16-cast once, reuse per call
    out = res_linear(x, params)
    jax.block_until_ready(out)
    ref = _ref(x, raw)
    assert out.shape == (B, ngh)
    assert jnp.allclose(out, ref, atol=2e-2, rtol=2e-2), float(
        jnp.max(jnp.abs(out - ref)))

    # Case 2: lane-aligned (exercises the no-padding path and >1 batch tile).
    B2, ngh2 = 16, 128
    x2 = jax.random.normal(kx2, (B2, ngh2), dtype=jnp.float32)
    raw2 = init_params(kp2, ngh2)
    out2 = res_linear(x2, prepare_params(raw2))
    jax.block_until_ready(out2)
    ref2 = _ref(x2, raw2)
    assert out2.shape == (B2, ngh2)
    assert jnp.allclose(out2, ref2, atol=2e-2, rtol=2e-2), float(
        jnp.max(jnp.abs(out2 - ref2)))

    print("KERNEL_OK")
</pallas_src>

<mosaic_0001>
module attributes {stable_mosaic.version = 11 : i64} {
  func.func @_res_linear_kernel(%arg0: i32, %arg1: memref<8x128xf32, #tpu.memory_space<vmem>>, %arg2: memref<128x128xbf16, #tpu.memory_space<vmem>>, %arg3: memref<1x128xf32, #tpu.memory_space<vmem>>, %arg4: memref<128x128xbf16, #tpu.memory_space<vmem>>, %arg5: memref<1x128xf32, #tpu.memory_space<vmem>>, %arg6: memref<8x128xf32, #tpu.memory_space<vmem>>, %arg7: memref<8x128xbf16, #tpu.memory_space<vmem>>) attributes {dimension_semantics = [#tpu.dimension_semantics<parallel>], iteration_bounds = array<i64: 1>, scalar_prefetch = 0 : i64, scratch_operands = 1 : i64, tpu.core_type = #tpu.core_type<tc>, window_params = [{transform_indices = @transform_0, window_bounds = array<i64: 8, 128>}, {pipeline_mode = #tpu.pipeline_mode<synchronous>, transform_indices = @transform_1, window_bounds = array<i64: 128, 128>}, {pipeline_mode = #tpu.pipeline_mode<synchronous>, transform_indices = @transform_2, window_bounds = array<i64: 1, 128>}, {pipeline_mode = #tpu.pipeline_mode<synchronous>, transform_indices = @transform_3, window_bounds = array<i64: 128, 128>}, {pipeline_mode = #tpu.pipeline_mode<synchronous>, transform_indices = @transform_4, window_bounds = array<i64: 1, 128>}, {transform_indices = @transform_5, window_bounds = array<i64: 8, 128>}]} {
    %c0 = arith.constant 0 : index
    %c0_0 = arith.constant 0 : index
    %0 = vector.load %arg1[%c0, %c0_0] : memref<8x128xf32, #tpu.memory_space<vmem>>, vector<8x128xf32>
    %1 = arith.truncf %0 : vector<8x128xf32> to vector<8x128xbf16>
    %c0_1 = arith.constant 0 : index
    %c0_2 = arith.constant 0 : index
    %2 = vector.load %arg2[%c0_1, %c0_2] : memref<128x128xbf16, #tpu.memory_space<vmem>>, vector<128x128xbf16>
    %cst = arith.constant dense<0.000000e+00> : vector<8x128xf32>
    %3 = tpu.matmul %1, %2, %cst {dimension_numbers = #tpu.dot_dimension_numbers<[1], [0], [0], [1], [0, 0, 1, 1], [], []>} : vector<8x128xbf16>, vector<128x128xbf16>, vector<8x128xf32> -> vector<8x128xf32>
    %c0_3 = arith.constant 0 : index
    %c0_4 = arith.constant 0 : index
    %4 = vector.load %arg3[%c0_3, %c0_4] : memref<1x128xf32, #tpu.memory_space<vmem>>, vector<1x128xf32>
    %5 = vector.broadcast %4 : vector<1x128xf32> to vector<8x128xf32>
    %6 = arith.addf %3, %5 : vector<8x128xf32>
    %cst_5 = arith.constant 0.000000e+00 : f32
    %7 = vector.broadcast %cst_5 : f32 to vector<8x128xf32>
    %8 = arith.maximumf %6, %7 : vector<8x128xf32>
    %9 = arith.truncf %8 : vector<8x128xf32> to vector<8x128xbf16>
    %c0_6 = arith.constant 0 : index
    %c0_7 = arith.constant 0 : index
    %10 = vector.load %arg7[%c0_6, %c0_7] : memref<8x128xbf16, #tpu.memory_space<vmem>>, vector<8x128xbf16>
    tpu.vector_store %arg7[%c0_6, %c0_7], %9 {strides = array<i32>} : memref<8x128xbf16, #tpu.memory_space<vmem>>, vector<8x128xbf16>,
    %c0_8 = arith.constant 0 : index
    %c0_9 = arith.constant 0 : index
    %11 = vector.load %arg7[%c0_8, %c0_9] : memref<8x128xbf16, #tpu.memory_space<vmem>>, vector<8x128xbf16>
    %c0_10 = arith.constant 0 : index
    %c0_11 = arith.constant 0 : index
    %12 = vector.load %arg4[%c0_10, %c0_11] : memref<128x128xbf16, #tpu.memory_space<vmem>>, vector<128x128xbf16>
    %cst_12 = arith.constant dense<0.000000e+00> : vector<8x128xf32>
    %13 = tpu.matmul %11, %12, %cst_12 {dimension_numbers = #tpu.dot_dimension_numbers<[1], [0], [0], [1], [0, 0, 1, 1], [], []>} : vector<8x128xbf16>, vector<128x128xbf16>, vector<8x128xf32> -> vector<8x128xf32>
    %c0_13 = arith.constant 0 : index
    %c0_14 = arith.constant 0 : index
    %14 = vector.load %arg5[%c0_13, %c0_14] : memref<1x128xf32, #tpu.memory_space<vmem>>, vector<1x128xf32>
    %15 = vector.broadcast %14 : vector<1x128xf32> to vector<8x128xf32>
    %16 = arith.addf %13, %15 : vector<8x128xf32>
    %cst_15 = arith.constant 0.000000e+00 : f32
    %17 = vector.broadcast %cst_15 : f32 to vector<8x128xf32>
    %18 = arith.maximumf %16, %17 : vector<8x128xf32>
    %19 = arith.addf %18, %0 : vector<8x128xf32>
    %c0_16 = arith.constant 0 : index
    %c0_17 = arith.constant 0 : index
    %20 = vector.load %arg6[%c0_16, %c0_17] : memref<8x128xf32, #tpu.memory_space<vmem>>, vector<8x128xf32>
    tpu.vector_store %arg6[%c0_16, %c0_17], %19 {strides = array<i32>} : memref<8x128xf32, #tpu.memory_space<vmem>>, vector<8x128xf32>,
    return
  }
  func.func @transform_0(%arg0: i32) -> (i32, i32) {
    %c0_i32 = arith.constant 0 : i32
    %c0_i32_0 = arith.constant 0 : i32
    return %arg0, %c0_i32 : i32, i32
  }
  func.func @transform_1(%arg0: i32) -> (i32, i32) {
    %c0_i32 = arith.constant 0 : i32
    %c0_i32_0 = arith.constant 0 : i32
    %c0_i32_1 = arith.constant 0 : i32
    return %c0_i32, %c0_i32_0 : i32, i32
  }
  func.func @transform_2(%arg0: i32) -> (i32, i32) {
    %c0_i32 = arith.constant 0 : i32
    %c0_i32_0 = arith.constant 0 : i32
    %c0_i32_1 = arith.constant 0 : i32
    return %c0_i32, %c0_i32_0 : i32, i32
  }
  func.func @transform_3(%arg0: i32) -> (i32, i32) {
    %c0_i32 = arith.constant 0 : i32
    %c0_i32_0 = arith.constant 0 : i32
    %c0_i32_1 = arith.constant 0 : i32
    return %c0_i32, %c0_i32_0 : i32, i32
  }
  func.func @transform_4(%arg0: i32) -> (i32, i32) {
    %c0_i32 = arith.constant 0 : i32
    %c0_i32_0 = arith.constant 0 : i32
    %c0_i32_1 = arith.constant 0 : i32
    return %c0_i32, %c0_i32_0 : i32, i32
  }
  func.func @transform_5(%arg0: i32) -> (i32, i32) {
    %c0_i32 = arith.constant 0 : i32
    %c0_i32_0 = arith.constant 0 : i32
    return %arg0, %c0_i32 : i32, i32
  }
}

module attributes {stable_mosaic.version = 11 : i64} {
  func.func @_res_linear_kernel(%arg0: i32, %arg1: memref<8x128xf32, #tpu.memory_space<vmem>>, %arg2: memref<128x128xbf16, #tpu.memory_space<vmem>>, %arg3: memref<1x128xf32, #tpu.memory_space<vmem>>, %arg4: memref<128x128xbf16, #tpu.memory_space<vmem>>, %arg5: memref<1x128xf32, #tpu.memory_space<vmem>>, %arg6: memref<8x128xf32, #tpu.memory_space<vmem>>, %arg7: memref<8x128xbf16, #tpu.memory_space<vmem>>) attributes {dimension_semantics = [#tpu.dimension_semantics<parallel>], iteration_bounds = array<i64: 1>, scalar_prefetch = 0 : i64, scratch_operands = 1 : i64, tpu.core_type = #tpu.core_type<tc>, window_params = [{transform_indices = @transform_0, window_bounds = array<i64: 8, 128>}, {pipeline_mode = #tpu.pipeline_mode<synchronous>, transform_indices = @transform_1, window_bounds = array<i64: 128, 128>}, {pipeline_mode = #tpu.pipeline_mode<synchronous>, transform_indices = @transform_2, window_bounds = array<i64: 1, 128>}, {pipeline_mode = #tpu.pipeline_mode<synchronous>, transform_indices = @transform_3, window_bounds = array<i64: 128, 128>}, {pipeline_mode = #tpu.pipeline_mode<synchronous>, transform_indices = @transform_4, window_bounds = array<i64: 1, 128>}, {transform_indices = @transform_5, window_bounds = array<i64: 8, 128>}]} {
    %c0 = arith.constant 0 : index
    %c0_0 = arith.constant 0 : index
    %0 = vector.load %arg1[%c0, %c0_0] : memref<8x128xf32, #tpu.memory_space<vmem>>, vector<8x128xf32>
    %1 = arith.truncf %0 : vector<8x128xf32> to vector<8x128xbf16>
    %c0_1 = arith.constant 0 : index
    %c0_2 = arith.constant 0 : index
    %2 = vector.load %arg2[%c0_1, %c0_2] : memref<128x128xbf16, #tpu.memory_space<vmem>>, vector<128x128xbf16>
    %cst = arith.constant dense<0.000000e+00> : vector<8x128xf32>
    %3 = tpu.matmul %1, %2, %cst {dimension_numbers = #tpu.dot_dimension_numbers<[1], [0], [0], [1], [0, 0, 1, 1], [], []>} : vector<8x128xbf16>, vector<128x128xbf16>, vector<8x128xf32> -> vector<8x128xf32>
    %c0_3 = arith.constant 0 : index
    %c0_4 = arith.constant 0 : index
    %4 = vector.load %arg3[%c0_3, %c0_4] : memref<1x128xf32, #tpu.memory_space<vmem>>, vector<1x128xf32>
    %5 = vector.broadcast %4 : vector<1x128xf32> to vector<8x128xf32>
    %6 = arith.addf %3, %5 : vector<8x128xf32>
    %cst_5 = arith.constant 0.000000e+00 : f32
    %7 = vector.broadcast %cst_5 : f32 to vector<8x128xf32>
    %8 = arith.maximumf %6, %7 : vector<8x128xf32>
    %9 = arith.truncf %8 : vector<8x128xf32> to vector<8x128xbf16>
    %c0_6 = arith.constant 0 : index
    %c0_7 = arith.constant 0 : index
    %10 = vector.load %arg7[%c0_6, %c0_7] : memref<8x128xbf16, #tpu.memory_space<vmem>>, vector<8x128xbf16>
    tpu.vector_store %arg7[%c0_6, %c0_7], %9 {strides = array<i32>} : memref<8x128xbf16, #tpu.memory_space<vmem>>, vector<8x128xbf16>,
    %c0_8 = arith.constant 0 : index
    %c0_9 = arith.constant 0 : index
    %11 = vector.load %arg7[%c0_8, %c0_9] : memref<8x128xbf16, #tpu.memory_space<vmem>>, vector<8x128xbf16>
    %c0_10 = arith.constant 0 : index
    %c0_11 = arith.constant 0 : index
    %12 = vector.load %arg4[%c0_10, %c0_11] : memref<128x128xbf16, #tpu.memory_space<vmem>>, vector<128x128xbf16>
    %cst_12 = arith.constant dense<0.000000e+00> : vector<8x128xf32>
    %13 = tpu.matmul %11, %12, %cst_12 {dimension_numbers = #tpu.dot_dimension_numbers<[1], [0], [0], [1], [0, 0, 1, 1], [], []>} : vector<8x128xbf16>, vector<128x128xbf16>, vector<8x128xf32> -> vector<8x128xf32>
    %c0_13 = arith.constant 0 : index
    %c0_14 = arith.constant 0 : index
    %14 = vector.load %arg5[%c0_13, %c0_14] : memref<1x128xf32, #tpu.memory_space<vmem>>, vector<1x128xf32>
    %15 = vector.broadcast %14 : vector<1x128xf32> to vector<8x128xf32>
    %16 = arith.addf %13, %15 : vector<8x128xf32>
    %cst_15 = arith.constant 0.000000e+00 : f32
    %17 = vector.broadcast %cst_15 : f32 to vector<8x128xf32>
    %18 = arith.maximumf %16, %17 : vector<8x128xf32>
    %19 = arith.addf %18, %0 : vector<8x128xf32>
    %c0_16 = arith.constant 0 : index
    %c0_17 = arith.constant 0 : index
    %20 = vector.load %arg6[%c0_16, %c0_17] : memref<8x128xf32, #tpu.memory_space<vmem>>, vector<8x128xf32>
    tpu.vector_store %arg6[%c0_16, %c0_17], %19 {strides = array<i32>} : memref<8x128xf32, #tpu.memory_space<vmem>>, vector<8x128xf32>,
    return
  }
  func.func @transform_0(%arg0: i32) -> (i32, i32) {
    %c0_i32 = arith.constant 0 : i32
    %c0_i32_0 = arith.constant 0 : i32
    return %arg0, %c0_i32 : i32, i32
  }
  func.func @transform_1(%arg0: i32) -> (i32, i32) {
    %c0_i32 = arith.constant 0 : i32
    %c0_i32_0 = arith.constant 0 : i32
    %c0_i32_1 = arith.constant 0 : i32
    return %c0_i32, %c0_i32_0 : i32, i32
  }
  func.func @transform_2(%arg0: i32) -> (i32, i32) {
    %c0_i32 = arith.constant 0 : i32
    %c0_i32_0 = arith.constant 0 : i32
    %c0_i32_1 = arith.constant 0 : i32
    return %c0_i32, %c0_i32_0 : i32, i32
  }
  func.func @transform_3(%arg0: i32) -> (i32, i32) {
    %c0_i32 = arith.constant 0 : i32
    %c0_i32_0 = arith.constant 0 : i32
    %c0_i32_1 = arith.constant 0 : i32
    return %c0_i32, %c0_i32_0 : i32, i32
  }
  func.func @transform_4(%arg0: i32) -> (i32, i32) {
    %c0_i32 = arith.constant 0 : i32
    %c0_i32_0 = arith.constant 0 : i32
    %c0_i32_1 = arith.constant 0 : i32
    return %c0_i32, %c0_i32_0 : i32, i32
  }
  func.func @transform_5(%arg0: i32) -> (i32, i32) {
    %c0_i32 = arith.constant 0 : i32
    %c0_i32_0 = arith.constant 0 : i32
    return %arg0, %c0_i32 : i32, i32
  }
}

</mosaic_0001>

<bundles_post_ra>
// kernel: tpu_custom_call.1
= control target key start
LH: loop header
LB: loop body
LE: loop exit
PB: predicated region body
PF: predicated region fallthrough
CT: control target
= control target key end

     0   :  { %10 = vsyncpa [#allocation4], 0  ;;  %s550_s0 = inlined_call_operand.hbm [shape: f32[8,128], index: 0, kind: input, shape index: {}]   ;;  %s551_s1 = inlined_call_operand.hbm [shape: bf16[128,128], index: 1, kind: input, shape index: {}]   ;;  %s552_s2 = inlined_call_operand.vmem [shape: f32[1,128], index: 2, kind: input, shape index: {}]   ;;  %s553_s3 = inlined_call_operand.hbm [shape: bf16[128,128], index: 3, kind: input, shape index: {}]   ;;  %s554_s4 = inlined_call_operand.vmem [shape: f32[1,128], index: 4, kind: input, shape index: {}]   ;;  %s555_s5 = inlined_call_operand.hbm [shape: f32[8,128], index: 5, kind: output, shape index: {}]  }
   0x1   :  { %11 = vsyncpa [#allocation7], 0 }
   0x2   :  { %12 = vsyncpa [#allocation5], 0  ;;  %s494_s18 = smov [#allocation6]  }
   0x3   :  { %s28_s19 = sshll.u32 %s494_s18, 4  ;;  %s29_s19 = int_to_ptr.vmem [resolvable:$true] %s28_s19 }
   0x4   :  { %s416_s20 = scalar_lea.vmem %s29_s19, 1024  ;;  %p421_p1 = scmp.lt.s32.totalorder %s29_s19, %s29_s19 }
   0x5   :  { %p417_p0 = scmp.ne.s32.totalorder %s29_s19, %s416_s20  ;;  %p422_p2 = scmp.lt.s32.totalorder %s416_s20, %s416_s20 }
   0x7   :  { %p423_p3 = por %p422_p2, %p421_p1 }
   0x9   :  { %p424_p4 = pnand %p423_p3, %p417_p0 }
   0xb   :  { %427 = shalt.err (!%p424_p4)
}
   0xc   :  { %s495_s21 = smov 64   ;;  %s496_s22 = smov 4  }
   0xd   :  { %34 = dma.hbm_to_vmem [thread:$0]  %s551_s1, 1024, %s29_s19, [#allocation7], %s495_s21, %s495_s21, %s496_s22  }
   0xe   :  { %s497_s25 = smov [#allocation3]   ;;  %s498_s27 = smov [#allocation8]  }
   0xf   :  { %s19_s26 = sshll.u32 %s497_s25, 4  ;;  %s42_s28 = sshll.u32 %s498_s27, 4  ;;  %s20_s26 = int_to_ptr.vmem [resolvable:$true] %s19_s26  ;;  %s43_s28 = int_to_ptr.vmem [resolvable:$true] %s42_s28 }
  0x10   :  { %s436_s29 = scalar_lea.vmem %s20_s26, 128  ;;  %p441_p6 = scmp.lt.s32.totalorder %s20_s26, %s20_s26 }
  0x11   :  { %p437_p5 = scmp.ne.s32.totalorder %s20_s26, %s436_s29  ;;  %p442_p7 = scmp.lt.s32.totalorder %s436_s29, %s436_s29 }
  0x13   :  { %p443_p8 = por %p442_p7, %p441_p6 }
  0x15   :  { %p444_p9 = pnand %p443_p8, %p437_p5 }
  0x17   :  { %447 = shalt.err (!%p444_p9)
}
  0x18   :  { %22 = dma.hbm_to_vmem [thread:$0]  %s550_s0, 128, %s20_s26, [#allocation4]  }
  0x19   :  { %s456_s7 = scalar_lea.vmem %s43_s28, 1024  ;;  %p461_p11 = scmp.lt.s32.totalorder %s43_s28, %s43_s28 }
  0x1a   :  { %p457_p10 = scmp.ne.s32.totalorder %s43_s28, %s456_s7  ;;  %p462_p12 = scmp.lt.s32.totalorder %s456_s7, %s456_s7 }
  0x1c   :  { %p463_p13 = por %p462_p12, %p461_p11 }
  0x1e   :  { %p464_p0 = pnand %p463_p13, %p457_p10 }
  0x20   :  { %467 = shalt.err (!%p464_p0)
}
  0x21   :  { %48 = dma.hbm_to_vmem [thread:$0]  %s553_s3, 1024, %s43_s28, [#allocation7], %s495_s21, %s495_s21, %s496_s22  }
  0x22   :  { %488 = dma.done.wait [#allocation4], 128  }
  0x23   :  { %489 = vsyncadd [#allocation4], 4294967168 }
  0x24   :  { %490 = dma.done.wait [#allocation7], 2048  }
  0x25   :  { %491 = vsyncadd [#allocation7], 4294965248  ;;  %v499_v0 = vmov 0.0   ;;  %vm500_vm0 = vmmov 0   ;;  %v392_v1 = vld [vmem:[#allocation6 + $0x38] sm:$0xff]   ;;  %v393_v2 = vld [vmem:[#allocation6 + $0x30] sm:$0xff]  }
  0x26   :  { %344 = vmatprep.subr.bf16.mxu0 %v499_v0  ;;  %360 = vmatprep.mubr.msk.bf16.mxu0 %vm500_vm0, %v499_v0  ;;  %v394_v3 = vld [vmem:[#allocation6 + $0x28] sm:$0xff]   ;;  %v400_v4 = vld [vmem:[#allocation8 + $0x38] sm:$0xff]   ;;  %v395_v5 = vld [vmem:[#allocation6 + $0x20] sm:$0xff]   ;;  %s501_s11 = smov [#allocation9]  }
  0x27   :  { %364 = vmatprep.subr.bf16.mxu1 %v499_v0  ;;  %380 = vmatprep.mubr.msk.bf16.mxu1 %vm500_vm0, %v499_v0  ;;  %v401_v6 = vld [vmem:[#allocation8 + $0x30] sm:$0xff]   ;;  %v396_v7 = vld [vmem:[#allocation6 + $0x18] sm:$0xff]   ;;  %v402_v8 = vld [vmem:[#allocation8 + $0x28] sm:$0xff]   ;;  %s298_s12 = sshll.u32 %s501_s11, 4  ;;  %s299_s12 = int_to_ptr.vmem [resolvable:$true] %s298_s12 }
  0x28   :  { %345 = vmatpush3.bf16.msra.mxu0 %v392_v1  ;;  %365 = vmatpush3.bf16.msra.mxu1 %v400_v4  ;;  %v397_v9 = vld [vmem:[#allocation6 + $0x10] sm:$0xff]   ;;  %v403_v10 = vld [vmem:[#allocation8 + $0x20] sm:$0xff]   ;;  %v398_v11 = vld [vmem:[#allocation6 + $0x8] sm:$0xff]   ;;  %p473_p2 = scmp.lt.s32.totalorder %s299_s12, %s299_s12 }
  0x29   :  { %346 = vmatprep.subr.bf16.mxu0 %v499_v0  ;;  %366 = vmatprep.subr.bf16.mxu1 %v499_v0  ;;  %v399_v12 = vld [vmem:[#allocation6] sm:$0xff]   ;;  %v61_v13 = vld [vmem:[#allocation3] sm:$0xff]  ;;  %v405_v16 = vld [vmem:[#allocation8 + $0x10] sm:$0xff]  }
  0x2a   :  { %v62_v14 = vpack.c.bf16 %v61_v13, %v61_v13  ;;  %v404_v15 = vld [vmem:[#allocation8 + $0x18] sm:$0xff]   ;;  %v406_v17 = vld [vmem:[#allocation8 + $0x8] sm:$0xff]   ;;  %v407_v18 = vld [vmem:[#allocation8] sm:$0xff]  }
  0x2b   :  { %v308_v19 = vld [vmem:[%s552_s2] ss:$0 sm:$0xff]  ;;  %s468_s2 = scalar_lea.vmem %s299_s12, 128 }
  0x2c   :  { %347 = vmatpush3.bf16.msra.mxu0 %v393_v2  ;;  %367 = vmatpush3.bf16.msra.mxu1 %v401_v6  ;;  %v317_v28 = vld [vmem:[%s554_s4] ss:$0 sm:$0xff]  ;;  %p469_p1 = scmp.ne.s32.totalorder %s299_s12, %s468_s2  ;;  %p474_p3 = scmp.lt.s32.totalorder %s468_s2, %s468_s2 }
  0x2d   :  { %348 = vmatprep.subr.bf16.mxu0 %v499_v0  ;;  %368 = vmatprep.subr.bf16.mxu1 %v499_v0 }
  0x2e   :  { %p475_p4 = por %p474_p3, %p473_p2 }
  0x30   :  { %349 = vmatpush3.bf16.msra.mxu0 %v394_v3  ;;  %369 = vmatpush3.bf16.msra.mxu1 %v402_v8  ;;  %p476_p5 = pnand %p475_p4, %p469_p1 }
  0x31   :  { %350 = vmatprep.subr.bf16.mxu0 %v499_v0  ;;  %370 = vmatprep.subr.bf16.mxu1 %v499_v0 }
  0x34   :  { %351 = vmatpush3.bf16.msra.mxu0 %v395_v5  ;;  %371 = vmatpush3.bf16.msra.mxu1 %v403_v10 }
  0x35   :  { %352 = vmatprep.subr.bf16.mxu0 %v499_v0  ;;  %372 = vmatprep.subr.bf16.mxu1 %v499_v0 }
  0x38   :  { %353 = vmatpush3.bf16.msra.mxu0 %v396_v7  ;;  %373 = vmatpush3.bf16.msra.mxu1 %v404_v15 }
  0x39   :  { %354 = vmatprep.subr.bf16.mxu0 %v499_v0  ;;  %374 = vmatprep.subr.bf16.mxu1 %v499_v0 }
  0x3c   :  { %355 = vmatpush3.bf16.msra.mxu0 %v397_v9  ;;  %375 = vmatpush3.bf16.msra.mxu1 %v405_v16 }
  0x3d   :  { %356 = vmatprep.subr.bf16.mxu0 %v499_v0  ;;  %376 = vmatprep.subr.bf16.mxu1 %v499_v0 }
  0x40   :  { %357 = vmatpush3.bf16.msra.mxu0 %v398_v11  ;;  %377 = vmatpush3.bf16.msra.mxu1 %v406_v17 }
  0x41   :  { %358 = vmatprep.subr.bf16.mxu0 %v499_v0  ;;  %378 = vmatprep.subr.bf16.mxu1 %v499_v0 }
  0x44   :  { %359 = vmatpush3.bf16.msra.mxu0 %v399_v12  ;;  %379 = vmatpush3.bf16.msra.mxu1 %v407_v18 }
  0x47   :  { %361 = vmatmul.mubr.bf16.vlgmr.msra.gmra.mxu0 %v62_v14 }
 0x107   :  { %v168_v20 = vpop.f32.mrf.mxu0 }
 0x108   :  { %v169_v21 = vadd.f32 %v308_v19, %v168_v20 }
 0x109   :  { %v362_v22 = vpop.f32.mrf.mxu0 }
 0x10a   :  { %v174_v23 = vmax.f32 %v169_v21, 0.0 }
 0x10b   :  { %v171_v24 = vpop.f32.mrf.mxu0 }
 0x10c   :  { %v175_v25 = vpack.c.bf16 %v174_v23, %v174_v23 }
 0x10d   :  { %v363_v26 = vpop.f32.mrf.mxu0 }
 0x10e   :  { %176 = vst [vmem:[#allocation2] sm:$0xf] %v175_v25 }
 0x115   :  { %v177_v27 = vld [vmem:[#allocation2] sm:$0xf] }
 0x116   :  { %381 = vmatmul.mubr.bf16.vlgmr.msra.gmra.mxu1 %v177_v27 }
 0x1d6   :  { %v283_v29 = vpop.f32.mrf.mxu1 }
 0x1d7   :  { %v284_v30 = vadd.f32 %v317_v28, %v283_v29 }
 0x1d8   :  { %v382_v31 = vpop.f32.mrf.mxu1 }
 0x1d9   :  { %v289_v32 = vmax.f32 %v284_v30, 0.0 }
 0x1da   :  { %v286_v33 = vpop.f32.mrf.mxu1 }
 0x1db   :  { %v290_v34 = vadd.f32 %v289_v32, %v61_v13 }
 0x1dc   :  { %v383_v35 = vpop.f32.mrf.mxu1 }
 0x1dd   :  { %291 = vst [vmem:[#allocation9] sm:$0xff] %v290_v34 }
 0x1de   :  { %479 = shalt.err (!%p476_p5)
}
 0x1df   :  { %301 = dma.vmem_to_hbm [thread:$0]  %s299_s12, 128, %s555_s5, [#allocation5]  }
 0x1e0   :  { %492 = dma.done.wait [#allocation5], 128  }
 0x1e1   :  { %493 = vsyncadd [#allocation5], 4294967168 }
 0x1e2   :  { %305 = vsyncpa [#allocation4], 1 }
 0x1e3   :  { %306 = vsyncpa [#allocation7], 1 }
 0x1e4   :  { %307 = vsyncpa [#allocation5], 1 }

// kernel: tpu_custom_call.1
= control target key start
LH: loop header
LB: loop body
LE: loop exit
PB: predicated region body
PF: predicated region fallthrough
CT: control target
= control target key end

     0   :  { %10 = vsyncpa [#allocation4], 0  ;;  %s550_s0 = inlined_call_operand.hbm [shape: f32[8,128], index: 0, kind: input, shape index: {}]   ;;  %s551_s1 = inlined_call_operand.hbm [shape: bf16[128,128], index: 1, kind: input, shape index: {}]   ;;  %s552_s2 = inlined_call_operand.vmem [shape: f32[1,128], index: 2, kind: input, shape index: {}]   ;;  %s553_s3 = inlined_call_operand.hbm [shape: bf16[128,128], index: 3, kind: input, shape index: {}]   ;;  %s554_s4 = inlined_call_operand.vmem [shape: f32[1,128], index: 4, kind: input, shape index: {}]   ;;  %s555_s5 = inlined_call_operand.hbm [shape: f32[8,128], index: 5, kind: output, shape index: {}]  }
   0x1   :  { %11 = vsyncpa [#allocation7], 0 }
   0x2   :  { %12 = vsyncpa [#allocation5], 0  ;;  %s494_s18 = smov [#allocation6]  }
   0x3   :  { %s28_s19 = sshll.u32 %s494_s18, 4  ;;  %s29_s19 = int_to_ptr.vmem [resolvable:$true] %s28_s19 }
   0x4   :  { %s416_s20 = scalar_lea.vmem %s29_s19, 1024  ;;  %p421_p1 = scmp.lt.s32.totalorder %s29_s19, %s29_s19 }
   0x5   :  { %p417_p0 = scmp.ne.s32.totalorder %s29_s19, %s416_s20  ;;  %p422_p2 = scmp.lt.s32.totalorder %s416_s20, %s416_s20 }
   0x7   :  { %p423_p3 = por %p422_p2, %p421_p1 }
   0x9   :  { %p424_p4 = pnand %p423_p3, %p417_p0 }
   0xb   :  { %427 = shalt.err (!%p424_p4)
}
   0xc   :  { %s495_s21 = smov 64   ;;  %s496_s22 = smov 4  }
   0xd   :  { %34 = dma.hbm_to_vmem [thread:$0]  %s551_s1, 1024, %s29_s19, [#allocation7], %s495_s21, %s495_s21, %s496_s22  }
   0xe   :  { %s497_s25 = smov [#allocation3]   ;;  %s498_s27 = smov [#allocation8]  }
   0xf   :  { %s19_s26 = sshll.u32 %s497_s25, 4  ;;  %s42_s28 = sshll.u32 %s498_s27, 4  ;;  %s20_s26 = int_to_ptr.vmem [resolvable:$true] %s19_s26  ;;  %s43_s28 = int_to_ptr.vmem [resolvable:$true] %s42_s28 }
  0x10   :  { %s436_s29 = scalar_lea.vmem %s20_s26, 128  ;;  %p441_p6 = scmp.lt.s32.totalorder %s20_s26, %s20_s26 }
  0x11   :  { %p437_p5 = scmp.ne.s32.totalorder %s20_s26, %s436_s29  ;;  %p442_p7 = scmp.lt.s32.totalorder %s436_s29, %s436_s29 }
  0x13   :  { %p443_p8 = por %p442_p7, %p441_p6 }
  0x15   :  { %p444_p9 = pnand %p443_p8, %p437_p5 }
  0x17   :  { %447 = shalt.err (!%p444_p9)
}
  0x18   :  { %22 = dma.hbm_to_vmem [thread:$0]  %s550_s0, 128, %s20_s26, [#allocation4]  }
  0x19   :  { %s456_s7 = scalar_lea.vmem %s43_s28, 1024  ;;  %p461_p11 = scmp.lt.s32.totalorder %s43_s28, %s43_s28 }
  0x1a   :  { %p457_p10 = scmp.ne.s32.totalorder %s43_s28, %s456_s7  ;;  %p462_p12 = scmp.lt.s32.totalorder %s456_s7, %s456_s7 }
  0x1c   :  { %p463_p13 = por %p462_p12, %p461_p11 }
  0x1e   :  { %p464_p0 = pnand %p463_p13, %p457_p10 }
  0x20   :  { %467 = shalt.err (!%p464_p0)
}
  0x21   :  { %48 = dma.hbm_to_vmem [thread:$0]  %s553_s3, 1024, %s43_s28, [#allocation7], %s495_s21, %s495_s21, %s496_s22  }
  0x22   :  { %488 = dma.done.wait [#allocation4], 128  }
  0x23   :  { %489 = vsyncadd [#allocation4], 4294967168 }
  0x24   :  { %490 = dma.done.wait [#allocation7], 2048  }
  0x25   :  { %491 = vsyncadd [#allocation7], 4294965248  ;;  %v499_v0 = vmov 0.0   ;;  %vm500_vm0 = vmmov 0   ;;  %v392_v1 = vld [vmem:[#allocation6 + $0x38] sm:$0xff]   ;;  %v393_v2 = vld [vmem:[#allocation6 + $0x30] sm:$0xff]  }
  0x26   :  { %344 = vmatprep.subr.bf16.mxu0 %v499_v0  ;;  %360 = vmatprep.mubr.msk.bf16.mxu0 %vm500_vm0, %v499_v0  ;;  %v394_v3 = vld [vmem:[#allocation6 + $0x28] sm:$0xff]   ;;  %v400_v4 = vld [vmem:[#allocation8 + $0x38] sm:$0xff]   ;;  %v395_v5 = vld [vmem:[#allocation6 + $0x20] sm:$0xff]   ;;  %s501_s11 = smov [#allocation9]  }
  0x27   :  { %364 = vmatprep.subr.bf16.mxu1 %v499_v0  ;;  %380 = vmatprep.mubr.msk.bf16.mxu1 %vm500_vm0, %v499_v0  ;;  %v401_v6 = vld [vmem:[#allocation8 + $0x30] sm:$0xff]   ;;  %v396_v7 = vld [vmem:[#allocation6 + $0x18] sm:$0xff]   ;;  %v402_v8 = vld [vmem:[#allocation8 + $0x28] sm:$0xff]   ;;  %s298_s12 = sshll.u32 %s501_s11, 4  ;;  %s299_s12 = int_to_ptr.vmem [resolvable:$true] %s298_s12 }
  0x28   :  { %345 = vmatpush3.bf16.msra.mxu0 %v392_v1  ;;  %365 = vmatpush3.bf16.msra.mxu1 %v400_v4  ;;  %v397_v9 = vld [vmem:[#allocation6 + $0x10] sm:$0xff]   ;;  %v403_v10 = vld [vmem:[#allocation8 + $0x20] sm:$0xff]   ;;  %v398_v11 = vld [vmem:[#allocation6 + $0x8] sm:$0xff]   ;;  %p473_p2 = scmp.lt.s32.totalorder %s299_s12, %s299_s12 }
  0x29   :  { %346 = vmatprep.subr.bf16.mxu0 %v499_v0  ;;  %366 = vmatprep.subr.bf16.mxu1 %v499_v0  ;;  %v399_v12 = vld [vmem:[#allocation6] sm:$0xff]   ;;  %v61_v13 = vld [vmem:[#allocation3] sm:$0xff]  ;;  %v405_v16 = vld [vmem:[#allocation8 + $0x10] sm:$0xff]  }
  0x2a   :  { %v62_v14 = vpack.c.bf16 %v61_v13, %v61_v13  ;;  %v404_v15 = vld [vmem:[#allocation8 + $0x18] sm:$0xff]   ;;  %v406_v17 = vld [vmem:[#allocation8 + $0x8] sm:$0xff]   ;;  %v407_v18 = vld [vmem:[#allocation8] sm:$0xff]  }
  0x2b   :  { %v308_v19 = vld [vmem:[%s552_s2] ss:$0 sm:$0xff]  ;;  %s468_s2 = scalar_lea.vmem %s299_s12, 128 }
  0x2c   :  { %347 = vmatpush3.bf16.msra.mxu0 %v393_v2  ;;  %367 = vmatpush3.bf16.msra.mxu1 %v401_v6  ;;  %v317_v28 = vld [vmem:[%s554_s4] ss:$0 sm:$0xff]  ;;  %p469_p1 = scmp.ne.s32.totalorder %s299_s12, %s468_s2  ;;  %p474_p3 = scmp.lt.s32.totalorder %s468_s2, %s468_s2 }
  0x2d   :  { %348 = vmatprep.subr.bf16.mxu0 %v499_v0  ;;  %368 = vmatprep.subr.bf16.mxu1 %v499_v0 }
  0x2e   :  { %p475_p4 = por %p474_p3, %p473_p2 }
  0x30   :  { %349 = vmatpush3.bf16.msra.mxu0 %v394_v3  ;;  %369 = vmatpush3.bf16.msra.mxu1 %v402_v8  ;;  %p476_p5 = pnand %p475_p4, %p469_p1 }
  0x31   :  { %350 = vmatprep.subr.bf16.mxu0 %v499_v0  ;;  %370 = vmatprep.subr.bf16.mxu1 %v499_v0 }
  0x34   :  { %351 = vmatpush3.bf16.msra.mxu0 %v395_v5  ;;  %371 = vmatpush3.bf16.msra.mxu1 %v403_v10 }
  0x35   :  { %352 = vmatprep.subr.bf16.mxu0 %v499_v0  ;;  %372 = vmatprep.subr.bf16.mxu1 %v499_v0 }
  0x38   :  { %353 = vmatpush3.bf16.msra.mxu0 %v396_v7  ;;  %373 = vmatpush3.bf16.msra.mxu1 %v404_v15 }
  0x39   :  { %354 = vmatprep.subr.bf16.mxu0 %v499_v0  ;;  %374 = vmatprep.subr.bf16.mxu1 %v499_v0 }
  0x3c   :  { %355 = vmatpush3.bf16.msra.mxu0 %v397_v9  ;;  %375 = vmatpush3.bf16.msra.mxu1 %v405_v16 }
  0x3d   :  { %356 = vmatprep.subr.bf16.mxu0 %v499_v0  ;;  %376 = vmatprep.subr.bf16.mxu1 %v499_v0 }
  0x40   :  { %357 = vmatpush3.bf16.msra.mxu0 %v398_v11  ;;  %377 = vmatpush3.bf16.msra.mxu1 %v406_v17 }
  0x41   :  { %358 = vmatprep.subr.bf16.mxu0 %v499_v0  ;;  %378 = vmatprep.subr.bf16.mxu1 %v499_v0 }
  0x44   :  { %359 = vmatpush3.bf16.msra.mxu0 %v399_v12  ;;  %379 = vmatpush3.bf16.msra.mxu1 %v407_v18 }
  0x47   :  { %361 = vmatmul.mubr.bf16.vlgmr.msra.gmra.mxu0 %v62_v14 }
 0x107   :  { %v168_v20 = vpop.f32.mrf.mxu0 }
 0x108   :  { %v169_v21 = vadd.f32 %v308_v19, %v168_v20 }
 0x109   :  { %v362_v22 = vpop.f32.mrf.mxu0 }
 0x10a   :  { %v174_v23 = vmax.f32 %v169_v21, 0.0 }
 0x10b   :  { %v171_v24 = vpop.f32.mrf.mxu0 }
 0x10c   :  { %v175_v25 = vpack.c.bf16 %v174_v23, %v174_v23 }
 0x10d   :  { %v363_v26 = vpop.f32.mrf.mxu0 }
 0x10e   :  { %176 = vst [vmem:[#allocation2] sm:$0xf] %v175_v25 }
 0x115   :  { %v177_v27 = vld [vmem:[#allocation2] sm:$0xf] }
 0x116   :  { %381 = vmatmul.mubr.bf16.vlgmr.msra.gmra.mxu1 %v177_v27 }
 0x1d6   :  { %v283_v29 = vpop.f32.mrf.mxu1 }
 0x1d7   :  { %v284_v30 = vadd.f32 %v317_v28, %v283_v29 }
 0x1d8   :  { %v382_v31 = vpop.f32.mrf.mxu1 }
 0x1d9   :  { %v289_v32 = vmax.f32 %v284_v30, 0.0 }
 0x1da   :  { %v286_v33 = vpop.f32.mrf.mxu1 }
 0x1db   :  { %v290_v34 = vadd.f32 %v289_v32, %v61_v13 }
 0x1dc   :  { %v383_v35 = vpop.f32.mrf.mxu1 }
 0x1dd   :  { %291 = vst [vmem:[#allocation9] sm:$0xff] %v290_v34 }
 0x1de   :  { %479 = shalt.err (!%p476_p5)
}
 0x1df   :  { %301 = dma.vmem_to_hbm [thread:$0]  %s299_s12, 128, %s555_s5, [#allocation5]  }
 0x1e0   :  { %492 = dma.done.wait [#allocation5], 128  }
 0x1e1   :  { %493 = vsyncadd [#allocation5], 4294967168 }
 0x1e2   :  { %305 = vsyncpa [#allocation4], 1 }
 0x1e3   :  { %306 = vsyncpa [#allocation7], 1 }
 0x1e4   :  { %307 = vsyncpa [#allocation5], 1 }

</bundles_post_ra>
